<compile_context>
chip_gen: v5e
topology: v5e:2x2
jax: 0.10.0
libtpu: 0.0.40
codegen_flags: <defaults>
</compile_context>

<pallas_src>
import functools

import jax
import jax.numpy as jnp
from jax.experimental import pallas as pl
from jax.experimental.pallas import tpu as pltpu


def _round_up(x: int, m: int) -> int:
    return ((x + m - 1) // m) * m


def _vmem_capacity_bytes() -> int:
    """Physical VMEM of the running chip (conservative fallback: v7x 64 MiB/TC)."""
    try:
        return int(pltpu.get_tpu_info().vmem_capacity_bytes)
    except Exception:
        return 64 << 20


# --------------------------------------------------------------------------- #
# Kernels
# --------------------------------------------------------------------------- #
def _joiner_resident_kernel(enc_ref, dec_ref, w_ref, b_ref, out_ref):
    """Weight fully resident in VMEM.  One grid step per row tile.

    enc/dec: (tm, D); w: (D, V_pad) (constant index_map -> DMA'd once);
    b: (1, V_pad) f32; out: (tm, V_pad).
    """
    x = jnp.tanh(enc_ref[...].astype(jnp.float32)
                 + dec_ref[...].astype(jnp.float32))
    acc = jnp.dot(x.astype(w_ref.dtype), w_ref[...],
                  preferred_element_type=jnp.float32)
    out_ref[...] = (acc + b_ref[...].astype(jnp.float32)).astype(out_ref.dtype)


def _joiner_streaming_kernel(enc_ref, dec_ref, w_ref, b_ref, out_ref, x_ref):
    """Weight streamed in vocab tiles.

    Grid = (row tiles ["parallel"], vocab tiles ["arbitrary", inner]).
    x_ref: (tm, D) scratch holding tanh(enc + dec) for the current row tile.
    NOTE: the @pl.when(j == 0) hoist is correct ONLY because axis 1 is the
    inner, sequentially executed "arbitrary" axis; do not mark it "parallel".
    """
    j = pl.program_id(1)

    @pl.when(j == 0)
    def _():
        x = jnp.tanh(enc_ref[...].astype(jnp.float32)
                     + dec_ref[...].astype(jnp.float32))
        x_ref[...] = x.astype(x_ref.dtype)

    acc = jnp.dot(x_ref[...], w_ref[...], preferred_element_type=jnp.float32)
    out_ref[...] = (acc + b_ref[...].astype(jnp.float32)).astype(out_ref.dtype)


# --------------------------------------------------------------------------- #
# Parameter preparation (hoisted out of the per-call hot path)
# --------------------------------------------------------------------------- #
def prepare_joiner_params(weight_t, bias, *, weight_dtype=jnp.bfloat16):
    """Pad vocab to a multiple of 128 and cast the weight ONCE (model init).

    weight_t: (joiner_dim, vocab_size)  (transpose of the nn.Linear weight)
    bias:     (vocab_size,) or (1, vocab_size)
    Returns (w_padded, b_padded, vocab_size).
    """
    D, V = weight_t.shape
    V_pad = _round_up(V, 128)
    w = jnp.pad(weight_t, ((0, 0), (0, V_pad - V))).astype(weight_dtype)
    b = jnp.pad(jnp.asarray(bias).reshape(1, V).astype(jnp.float32),
                ((0, 0), (0, V_pad - V)))
    return w, b, V


# --------------------------------------------------------------------------- #
# Per-call wrapper
# --------------------------------------------------------------------------- #
def onnx_joiner(encoder_out, decoder_out, w_padded, b_padded, *,
                vocab_size=None, tm=None, tv=None, out_dtype=jnp.bfloat16):
    """encoder_out, decoder_out: (N, D); w_padded: (D, V_pad); b_padded: (1, V_pad)."""
    N, D = encoder_out.shape
    Dw, V_pad = w_padded.shape
    assert Dw == D, "prepared weight must be (joiner_dim, vocab_pad)"
    if vocab_size is None:
        vocab_size = V_pad

    in_itemsize = jnp.dtype(encoder_out.dtype).itemsize
    w_itemsize = jnp.dtype(w_padded.dtype).itemsize
    out_itemsize = jnp.dtype(out_dtype).itemsize

    # Row-tile alignment follows sublane packing of the input dtype
    # (f32 -> 8, bf16 -> 16, int8/fp8 -> 32).
    row_align = {4: 8, 2: 16, 1: 32}.get(in_itemsize, 8)

    vmem_cap = _vmem_capacity_bytes()
    budget = int(vmem_cap * 0.7)  # headroom for compiler scratch / regalloc

    # Per-generation default row tile: v5e/v6e (128 MiB VMEM) want tm ~1024 to
    # cross the weight-reuse roofline when streaming; v7x (64 MiB/TC, 3.2 TB/s)
    # needs less reuse -> 512.
    if tm is None:
        tm = 1024 if vmem_cap >= (100 << 20) else 512
    n_aligned = _round_up(N, row_align)
    tm = max(row_align, min(_round_up(tm, row_align), n_aligned))

    # ----------------------- resident-weight feasibility --------------------
    def resident_bytes(tm_):
        return (2 * D * V_pad * w_itemsize          # weight (allow 2 buffers)
                + 2 * 2 * tm_ * D * in_itemsize     # enc + dec (double-buffered)
                + 2 * V_pad * 4                     # bias
                + 2 * tm_ * V_pad * out_itemsize)   # output tile

    tm_res = tm
    while tm_res > row_align and resident_bytes(tm_res) > budget:
        tm_res = max(row_align, _round_up(tm_res // 2, row_align))
    use_resident = (tv is None) and resident_bytes(tm_res) <= budget

    if use_resident:
        # --------------------------- RESIDENT mode --------------------------
        tm = tm_res
        # Keep >=2 row tiles when the batch allows it so both v7x TensorCores
        # (megacore "parallel" axis) get work; weight traffic is unaffected.
        if tm == n_aligned and n_aligned >= 2 * row_align:
            tm = _round_up((n_aligned + 1) // 2, row_align)

        N_pad = _round_up(N, tm)
        enc = encoder_out if N_pad == N else jnp.pad(encoder_out,
                                                     ((0, N_pad - N), (0, 0)))
        dec = decoder_out if N_pad == N else jnp.pad(decoder_out,
                                                     ((0, N_pad - N), (0, 0)))

        footprint = resident_bytes(tm)
        vmem_limit = int(min(vmem_cap,
                             max(int(footprint * 1.2) + (8 << 20), 32 << 20)))

        out_padded = pl.pallas_call(
            _joiner_resident_kernel,
            out_shape=jax.ShapeDtypeStruct((N_pad, V_pad), out_dtype),
            grid_spec=pltpu.PrefetchScalarGridSpec(
                num_scalar_prefetch=0,
                grid=(N_pad // tm,),
                in_specs=[
                    pl.BlockSpec((tm, D), lambda i: (i, 0)),       # encoder rows
                    pl.BlockSpec((tm, D), lambda i: (i, 0)),       # decoder rows
                    pl.BlockSpec((D, V_pad), lambda i: (0, 0)),    # weight: resident
                    pl.BlockSpec((1, V_pad), lambda i: (0, 0)),    # bias: resident
                ],
                out_specs=pl.BlockSpec((tm, V_pad), lambda i: (i, 0)),
            ),
            compiler_params=pltpu.CompilerParams(
                dimension_semantics=("parallel",),
                vmem_limit_bytes=vmem_limit,
            ),
        )(enc, dec, w_padded, b_padded)
    else:
        # -------------------------- STREAMING mode ---------------------------
        tv_req = 1024 if tv is None else tv

        def fixed_bytes(tm_):      # enc + dec tiles + tanh scratch
            return 2 * 2 * tm_ * D * in_itemsize + tm_ * D * w_itemsize

        def per_tv_bytes(tm_):     # weight tile + output tile + bias, per lane
            return 2 * (D * w_itemsize + tm_ * out_itemsize + 4)

        # Shrink tm (rarely needed) until at least a 128-wide vocab tile fits.
        while tm > row_align and fixed_bytes(tm) + 128 * per_tv_bytes(tm) > budget:
            tm = max(row_align, _round_up(tm // 2, row_align))

        tv_cap = max(128, ((budget - fixed_bytes(tm)) // per_tv_bytes(tm))
                     // 128 * 128)
        tv_desired = max(128, min(_round_up(tv_req, 128), tv_cap, V_pad))
        # Largest multiple of 128 that divides V_pad and is <= tv_desired.
        tv = 128
        cand = tv_desired
        while cand >= 128:
            if V_pad % cand == 0:
                tv = cand
                break
            cand -= 128

        N_pad = _round_up(N, tm)
        enc = encoder_out if N_pad == N else jnp.pad(encoder_out,
                                                     ((0, N_pad - N), (0, 0)))
        dec = decoder_out if N_pad == N else jnp.pad(decoder_out,
                                                     ((0, N_pad - N), (0, 0)))

        footprint = fixed_bytes(tm) + tv * per_tv_bytes(tm)
        vmem_limit = int(min(vmem_cap,
                             max(int(footprint * 1.2) + (8 << 20), 32 << 20)))

        out_padded = pl.pallas_call(
            _joiner_streaming_kernel,
            out_shape=jax.ShapeDtypeStruct((N_pad, V_pad), out_dtype),
            grid_spec=pltpu.PrefetchScalarGridSpec(
                num_scalar_prefetch=0,
                grid=(N_pad // tm, V_pad // tv),
                in_specs=[
                    pl.BlockSpec((tm, D), lambda i, j: (i, 0)),   # enc (resident over j)
                    pl.BlockSpec((tm, D), lambda i, j: (i, 0)),   # dec (resident over j)
                    pl.BlockSpec((D, tv), lambda i, j: (0, j)),   # weight tile (streamed)
                    pl.BlockSpec((1, tv), lambda i, j: (0, j)),   # bias tile
                ],
                out_specs=pl.BlockSpec((tm, tv), lambda i, j: (i, j)),
                scratch_shapes=[pltpu.VMEM((tm, D), w_padded.dtype)],  # hoisted tanh
            ),
            compiler_params=pltpu.CompilerParams(
                # Vocab axis MUST stay "arbitrary" (inner/sequential) for the
                # tanh-scratch hoist to be correct.
                dimension_semantics=("parallel", "arbitrary"),
                vmem_limit_bytes=vmem_limit,
            ),
        )(enc, dec, w_padded, b_padded)

    if N_pad != N or V_pad != vocab_size:
        out_padded = out_padded[:N, :vocab_size]
    return out_padded


def reference(encoder_out, decoder_out, weight_t, bias):
    return jnp.tanh(encoder_out + decoder_out) @ weight_t + bias.reshape(1, -1)


if __name__ == "__main__":
    # Small shapes consistent with the module: N utterances, joiner_dim, vocab.
    N = 8
    joiner_dim = 32
    vocab_size = 256

    key = jax.random.PRNGKey(0)
    k_enc, k_dec, k_w, k_b = jax.random.split(key, 4)

    encoder_out = jax.random.normal(k_enc, (N, joiner_dim), dtype=jnp.float32)
    decoder_out = jax.random.normal(k_dec, (N, joiner_dim), dtype=jnp.float32)

    # Deterministic synthetic nn.Linear(joiner_dim, vocab_size) parameters.
    # PyTorch stores weight as (vocab_size, joiner_dim); kernel uses its transpose.
    weight = jax.random.normal(k_w, (vocab_size, joiner_dim), dtype=jnp.float32) * 0.1
    bias = jax.random.normal(k_b, (vocab_size,), dtype=jnp.float32) * 0.1
    weight_t = weight.T  # (joiner_dim, vocab_size)

    # Weight pad/cast done once at "model init", not per call.
    w_pad, b_pad, V = prepare_joiner_params(weight_t, bias)

    ref = reference(encoder_out, decoder_out, weight_t, bias)

    # Resident-weight path (auto-selected for this small weight).
    run_resident = jax.jit(functools.partial(onnx_joiner, vocab_size=V))
    out = jax.block_until_ready(run_resident(encoder_out, decoder_out, w_pad, b_pad))
    assert out.shape == (N, vocab_size)
    assert jnp.allclose(out.astype(jnp.float32), ref, atol=2e-2, rtol=2e-2), \
        "resident-mode mismatch vs reference"

    # Streaming path (forced via explicit tv) exercised for coverage.
    run_stream = jax.jit(functools.partial(onnx_joiner, vocab_size=V, tv=128))
    out_s = jax.block_until_ready(run_stream(encoder_out, decoder_out, w_pad, b_pad))
    assert out_s.shape == (N, vocab_size)
    assert jnp.allclose(out_s.astype(jnp.float32), ref, atol=2e-2, rtol=2e-2), \
        "streaming-mode mismatch vs reference"

    print("KERNEL_OK")
</pallas_src>

<mosaic_0001>
module attributes {stable_mosaic.version = 11 : i64} {
  func.func @_joiner_resident_kernel(%arg0: i32, %arg1: memref<8x32xf32, #tpu.memory_space<vmem>>, %arg2: memref<8x32xf32, #tpu.memory_space<vmem>>, %arg3: memref<32x256xbf16, #tpu.memory_space<vmem>>, %arg4: memref<1x256xf32, #tpu.memory_space<vmem>>, %arg5: memref<8x256xbf16, #tpu.memory_space<vmem>>) attributes {dimension_semantics = [#tpu.dimension_semantics<parallel>], iteration_bounds = array<i64: 1>, scalar_prefetch = 0 : i64, scratch_operands = 0 : i64, tpu.core_type = #tpu.core_type<tc>, window_params = [{transform_indices = @transform_0, window_bounds = array<i64: 8, 32>}, {transform_indices = @transform_1, window_bounds = array<i64: 8, 32>}, {pipeline_mode = #tpu.pipeline_mode<synchronous>, transform_indices = @transform_2, window_bounds = array<i64: 32, 256>}, {pipeline_mode = #tpu.pipeline_mode<synchronous>, transform_indices = @transform_3, window_bounds = array<i64: 1, 256>}, {transform_indices = @transform_4, window_bounds = array<i64: 8, 256>}]} {
    %c0 = arith.constant 0 : index
    %c0_0 = arith.constant 0 : index
    %0 = vector.load %arg1[%c0, %c0_0] : memref<8x32xf32, #tpu.memory_space<vmem>>, vector<8x32xf32>
    %c0_1 = arith.constant 0 : index
    %c0_2 = arith.constant 0 : index
    %1 = vector.load %arg2[%c0_1, %c0_2] : memref<8x32xf32, #tpu.memory_space<vmem>>, vector<8x32xf32>
    %2 = arith.addf %0, %1 : vector<8x32xf32>
    %3 = math.tanh %2 : vector<8x32xf32>
    %4 = arith.truncf %3 : vector<8x32xf32> to vector<8x32xbf16>
    %c0_3 = arith.constant 0 : index
    %c0_4 = arith.constant 0 : index
    %5 = vector.load %arg3[%c0_3, %c0_4] : memref<32x256xbf16, #tpu.memory_space<vmem>>, vector<32x256xbf16>
    %cst = arith.constant dense<0.000000e+00> : vector<8x256xf32>
    %6 = tpu.matmul %4, %5, %cst {dimension_numbers = #tpu.dot_dimension_numbers<[1], [0], [0], [1], [0, 0, 1, 1], [], []>} : vector<8x32xbf16>, vector<32x256xbf16>, vector<8x256xf32> -> vector<8x256xf32>
    %c0_5 = arith.constant 0 : index
    %c0_6 = arith.constant 0 : index
    %7 = vector.load %arg4[%c0_5, %c0_6] : memref<1x256xf32, #tpu.memory_space<vmem>>, vector<1x256xf32>
    %8 = vector.broadcast %7 : vector<1x256xf32> to vector<8x256xf32>
    %9 = arith.addf %6, %8 : vector<8x256xf32>
    %10 = arith.truncf %9 : vector<8x256xf32> to vector<8x256xbf16>
    %c0_7 = arith.constant 0 : index
    %c0_8 = arith.constant 0 : index
    %11 = vector.load %arg5[%c0_7, %c0_8] : memref<8x256xbf16, #tpu.memory_space<vmem>>, vector<8x256xbf16>
    tpu.vector_store %arg5[%c0_7, %c0_8], %10 {strides = array<i32>} : memref<8x256xbf16, #tpu.memory_space<vmem>>, vector<8x256xbf16>,
    return
  }
  func.func @transform_0(%arg0: i32) -> (i32, i32) {
    %c0_i32 = arith.constant 0 : i32
    %c0_i32_0 = arith.constant 0 : i32
    return %arg0, %c0_i32 : i32, i32
  }
  func.func @transform_1(%arg0: i32) -> (i32, i32) {
    %c0_i32 = arith.constant 0 : i32
    %c0_i32_0 = arith.constant 0 : i32
    return %arg0, %c0_i32 : i32, i32
  }
  func.func @transform_2(%arg0: i32) -> (i32, i32) {
    %c0_i32 = arith.constant 0 : i32
    %c0_i32_0 = arith.constant 0 : i32
    %c0_i32_1 = arith.constant 0 : i32
    return %c0_i32, %c0_i32_0 : i32, i32
  }
  func.func @transform_3(%arg0: i32) -> (i32, i32) {
    %c0_i32 = arith.constant 0 : i32
    %c0_i32_0 = arith.constant 0 : i32
    %c0_i32_1 = arith.constant 0 : i32
    return %c0_i32, %c0_i32_0 : i32, i32
  }
  func.func @transform_4(%arg0: i32) -> (i32, i32) {
    %c0_i32 = arith.constant 0 : i32
    %c0_i32_0 = arith.constant 0 : i32
    return %arg0, %c0_i32 : i32, i32
  }
}

</mosaic_0001>

<bundles_post_ra>
// kernel: onnx_joiner.1
= control target key start
LH: loop header
LB: loop body
LE: loop exit
PB: predicated region body
PF: predicated region fallthrough
CT: control target
= control target key end

     0   :  { %9 = vsyncpa [#allocation3], 0  ;;  %s325_s0 = inlined_call_operand.hbm [shape: f32[8,32], index: 0, kind: input, shape index: {}]   ;;  %s326_s1 = inlined_call_operand.hbm [shape: f32[8,32], index: 1, kind: input, shape index: {}]   ;;  %s327_s2 = inlined_call_operand.hbm [shape: bf16[32,256], index: 2, kind: input, shape index: {}]   ;;  %s328_s3 = inlined_call_operand.vmem [shape: f32[1,256], index: 3, kind: input, shape index: {}]   ;;  %s329_s4 = inlined_call_operand.hbm [shape: bf16[8,256], index: 4, kind: output, shape index: {}]  }
   0x1   :  { %10 = vsyncpa [#allocation6], 0  ;;  %s28_s17 = sshll.u32 %s326_s1, 4  ;;  %s29_s17 = int_to_ptr.hbm [resolvable:$true] %s28_s17 }
   0x2   :  { %11 = vsyncpa [#allocation4], 0  ;;  %s279_s18 = smov [#allocation5]   ;;  %s17_s22 = sshll.u32 %s325_s0, 4  ;;  %s18_s22 = int_to_ptr.hbm [resolvable:$true] %s17_s22 }
   0x3   :  { %s30_s19 = sshll.u32 %s279_s18, 4  ;;  %s280_s23 = smov [#allocation2]   ;;  %s31_s19 = int_to_ptr.vmem [resolvable:$true] %s30_s19 }
   0x4   :  { %33 = dma.hbm_to_vmem [thread:$0]  %s29_s17, 128, %s31_s19, [#allocation6]  }
   0x5   :  { %s19_s24 = sshll.u32 %s280_s23, 4  ;;  %s38_s27 = sshll.u32 %s327_s2, 4  ;;  %s20_s24 = int_to_ptr.vmem [resolvable:$true] %s19_s24  ;;  %s39_s27 = int_to_ptr.hbm [resolvable:$true] %s38_s27 }
   0x6   :  { %22 = dma.hbm_to_vmem [thread:$0]  %s18_s22, 128, %s20_s24, [#allocation3]  }
   0x7   :  { %s281_s1 = smov [#allocation7]   ;;  %s282_s29 = smov 128  }
   0x8   :  { %s40_s28 = sshll.u32 %s281_s1, 4  ;;  %s283_s30 = smov 8   ;;  %s41_s28 = int_to_ptr.vmem [resolvable:$true] %s40_s28 }
   0x9   :  { %46 = dma.hbm_to_vmem [thread:$0]  %s39_s27, 512, %s41_s28, [#allocation6], %s282_s29, %s282_s29, %s283_s30  }
   0xa   :  { %273 = dma.done.wait [#allocation3], 128  }
   0xb   :  { %274 = vsyncadd [#allocation3], 4294967168 }
   0xc   :  { %275 = dma.done.wait [#allocation6], 640  }
   0xd   :  { %276 = vsyncadd [#allocation6], 4294966656  ;;  %v157_v0 = vld [vmem:[#allocation7 + $0x10] sm:$0xf]  ;;  %v168_v1 = vld [vmem:[#allocation7 + $0x14] sm:$0xf0] }
   0xe   :  { %v167_v2 = vld [vmem:[#allocation7 + $0x14] sm:$0xf]  ;;  %v158_v3 = vor.u32 %v168_v1, %v157_v0  ;;  %v159_v4 = vld [vmem:[#allocation7 + $0x18] sm:$0xf0]  ;;  %v149_v5 = vld [vmem:[#allocation7] sm:$0xf] }
   0xf   :  { %v166_v6 = vld [vmem:[#allocation7 + $0x4] sm:$0xf0]  ;;  %v162_v7 = vor.u32 %v167_v2, %v159_v4  ;;  %v165_v8 = vld [vmem:[#allocation7 + $0x4] sm:$0xf]  ;;  %v151_v9 = vld [vmem:[#allocation7 + $0x8] sm:$0xf0] }
  0x10   :  { %v62_v10 = vld [vmem:[#allocation2] sm:$0xff]  ;;  %107 = vmatpush.bf16.msra.mxu0 %v158_v3  ;;  %v150_v11 = vor.u32 %v166_v6, %v149_v5  ;;  %v63_v12 = vld [vmem:[#allocation5] sm:$0xff]  ;;  %v154_v13 = vor.u32 %v165_v8, %v151_v9  ;;  %vm97_vm0 = vcmask 261120   ;;  %s284_s5 = smov [#allocation8]   ;;  %s136_s9 = sshll.u32 %s329_s4, 4  ;;  %s137_s9 = int_to_ptr.hbm [resolvable:$true] %s136_s9 }
  0x11   :  { %120 = vmatpush.bf16.msra.mxu1 %v162_v7  ;;  %v64_v14 = vadd.f32 %v63_v12, %v62_v10  ;;  %v71_v17 = vld [vmem:[%s328_s3] sm:$0x3]  ;;  %s134_s6 = sshll.u32 %s284_s5, 4  ;;  %s135_s6 = int_to_ptr.vmem [resolvable:$true] %s134_s6 }
  0x12   :  { %v73_v18 = vperm.slane %v71_v17, 0  ;;  %v74_v19 = vperm.slane %v71_v17, 1 }
  0x13   :  { %175 = vtanh.f32 %v64_v14 }
  0x14   :  { %108 = vmatpush.bf16.msra.mxu0 %v150_v11 }
  0x15   :  { %121 = vmatpush.bf16.msra.mxu1 %v154_v13 }
  0x19   :  { %v176_v15 = vpop.eup %175 }
  0x1a   :  { %v66_v16 = vpack.c.bf16 %v176_v15, %v176_v15 }
  0x1c   :  { %163 = vmatmul.msk.bf16.vlgmr.msra.gmra.mxu0 %vm97_vm0, %v66_v16  ;;  %164 = vmatmul.msk.bf16.vlgmr.msra.gmra.mxu1 %vm97_vm0, %v66_v16 }
  0x99   :  { %v110_v20 = vpop.f32.mrf.mxu0  ;;  %v123_v21 = vpop.f32.mrf.mxu1 }
  0x9a   :  { %v111_v22 = vadd.f32 %v110_v20, %v73_v18  ;;  %v124_v23 = vadd.f32 %v123_v21, %v74_v19 }
  0x9c   :  { %v127_v24 = vpack.c.bf16 %v124_v23, %v111_v22 }
  0x9e   :  { %128 = vst [vmem:[#allocation8] sm:$0xff] %v127_v24 }
  0x9f   :  { %139 = dma.vmem_to_hbm [thread:$0]  %s135_s6, 128, %s137_s9, [#allocation4]  }
  0xa1   :  { %v112_v25 = vpop.f32.mrf.mxu0  ;;  %v125_v26 = vpop.f32.mrf.mxu1 }
  0xa2   :  { %277 = dma.done.wait [#allocation4], 128  }
  0xa3   :  { %278 = vsyncadd [#allocation4], 4294967168 }
  0xa4   :  { %144 = vsyncpa [#allocation3], 1 }
  0xa5   :  { %145 = vsyncpa [#allocation6], 1 }
  0xa6   :  { %146 = vsyncpa [#allocation4], 1 }

</bundles_post_ra>
